<compile_context>
chip_gen: v6e
topology: v6e:2x2x1
jax: 0.10.0
libtpu: 0.0.40
codegen_flags: <defaults>
</compile_context>

<pallas_src>
import functools
import math

import jax
import jax.numpy as jnp
from jax.experimental import pallas as pl
from jax.experimental.pallas import tpu as pltpu


# ----------------------------- kernel ----------------------------------------


def gcn_classifier_kernel(x_ref, adj_ref, wg_ref, bg_ref, wm_ref, bm_ref, out_ref):
    """Fused GraphConvolution + ReLU + (eval) dropout + Linear for one row tile.

    x_ref   : (N_pad, nembed)      full feature matrix (VMEM resident)
    adj_ref : (tm,    N_pad)       row tile of the dense (row-normalized) adjacency
    wg_ref  : (nembed, nhid_pad)   GCN weight   (zero-padded to 128 lanes)
    bg_ref  : (1,      nhid_pad)   GCN bias
    wm_ref  : (nhid_pad, nclass_pad) classifier weight
    bm_ref  : (1,        nclass_pad) classifier bias
    out_ref : (tm,       nclass_pad) output row tile (lane-dense store)
    """
    bf16 = jnp.bfloat16

    # support = x @ W_gc   (bf16 MXU inputs, f32 accumulation)
    support = jnp.dot(x_ref[...].astype(bf16), wg_ref[...].astype(bf16),
                      preferred_element_type=jnp.float32)

    # h = relu(adj_tile @ support + b_gc)
    h = jnp.dot(adj_ref[...].astype(bf16), support.astype(bf16),
                preferred_element_type=jnp.float32) + bg_ref[...]
    h = jnp.maximum(h, 0.0)

    # F.dropout(training=False) == identity.
    # TODO(synk): training-mode dropout (pltpu.prng_random_bits mask) not implemented.

    # out = h @ W_mlp + b_mlp
    out_ref[...] = jnp.dot(h.astype(bf16), wm_ref[...].astype(bf16),
                           preferred_element_type=jnp.float32) + bm_ref[...]


# ----------------------------- wrapper ----------------------------------------


def _round_up(v, m):
    return (v + m - 1) // m * m


@functools.partial(jax.jit, static_argnames=("row_tile",))
def gcn_classifier_forward(x, adj, wg, bg, wm, bm, row_tile=128):
    """Eval-mode GCN_Classifier forward. Returns (N, nclass) float32 logits."""
    n, nembed = x.shape
    nhid = wg.shape[1]
    nclass = wm.shape[1]

    # Pad hidden / class dims to the 128-lane width: full-width MXU passes and
    # unmasked vector stores (zero-padded weight columns contribute nothing).
    nhid_p = _round_up(nhid, 128)
    nclass_p = _round_up(nclass, 128)

    # Row tiling of adj / output (sublane-aligned), so the N x N adjacency
    # stream is pipelined and the grid axis can be sharded across TensorCores.
    tm = min(row_tile, _round_up(n, 8))
    n_p = _round_up(n, tm)

    f32 = jnp.float32
    x_p = jnp.pad(x.astype(f32), ((0, n_p - n), (0, 0)))
    adj_p = jnp.pad(adj.astype(f32), ((0, n_p - n), (0, n_p - n)))
    wg_p = jnp.pad(wg.astype(f32), ((0, 0), (0, nhid_p - nhid)))
    bg_p = jnp.pad(bg.reshape(1, -1).astype(f32), ((0, 0), (0, nhid_p - nhid)))
    wm_p = jnp.pad(wm.astype(f32), ((0, nhid_p - nhid), (0, nclass_p - nclass)))
    bm_p = jnp.pad(bm.reshape(1, -1).astype(f32), ((0, 0), (0, nclass_p - nclass)))

    grid = (n_p // tm,)

    out = pl.pallas_call(
        gcn_classifier_kernel,
        out_shape=jax.ShapeDtypeStruct((n_p, nclass_p), f32),
        grid_spec=pltpu.PrefetchScalarGridSpec(
            num_scalar_prefetch=0,
            grid=grid,
            in_specs=[
                # constant block index -> fetched once, stays resident in VMEM
                pl.BlockSpec((n_p, nembed), lambda i: (0, 0)),      # x
                # row tile of adjacency: the only per-step HBM stream
                pl.BlockSpec((tm, n_p), lambda i: (i, 0)),          # adj
                pl.BlockSpec((nembed, nhid_p), lambda i: (0, 0)),   # W_gc
                pl.BlockSpec((1, nhid_p), lambda i: (0, 0)),        # b_gc
                pl.BlockSpec((nhid_p, nclass_p), lambda i: (0, 0)), # W_mlp
                pl.BlockSpec((1, nclass_p), lambda i: (0, 0)),      # b_mlp
            ],
            out_specs=pl.BlockSpec((tm, nclass_p), lambda i: (i, 0)),
        ),
        compiler_params=pltpu.CompilerParams(
            dimension_semantics=("parallel",),   # row tiles are independent
            vmem_limit_bytes=32 << 20,
        ),
    )(x_p, adj_p, wg_p, bg_p, wm_p, bm_p)

    return out[:n, :nclass]


# ----------------------------- main -------------------------------------------


if __name__ == "__main__":
    N = 256          # number of graph nodes
    NEMBED = 32      # input feature dim
    NHID = 64        # GCN hidden dim
    NCLASS = 16      # number of classes
    # dropout probability is irrelevant in eval mode (identity)

    root = jax.random.PRNGKey(0)
    kx, ka, kwg, kbg, kwm, kbm = jax.random.split(root, 6)

    # node features
    x = jax.random.normal(kx, (N, NEMBED), jnp.float32)

    # symmetric, self-looped, row-normalized dense adjacency (spmm done densely)
    a = (jax.random.uniform(ka, (N, N)) < 0.1).astype(jnp.float32)
    a = jnp.maximum(a, a.T) + jnp.eye(N, dtype=jnp.float32)
    adj = a / jnp.sum(a, axis=1, keepdims=True)

    # parameters mirroring the PyTorch inits
    stdv = 1.0 / math.sqrt(NHID)                     # GraphConvolution.reset_parameters
    wg = jax.random.uniform(kwg, (NEMBED, NHID), jnp.float32, -stdv, stdv)
    bg = jax.random.uniform(kbg, (NHID,), jnp.float32, -stdv, stdv)
    wm = 0.05 * jax.random.normal(kwm, (NHID, NCLASS), jnp.float32)  # nn.init.normal_(std=0.05)
    bm = jax.random.uniform(kbm, (NCLASS,), jnp.float32, -stdv, stdv)  # Linear default bias init

    out = gcn_classifier_forward(x, adj, wg, bg, wm, bm)
    out = jax.block_until_ready(out)

    # pure-JAX f32 reference (eval mode)
    hi = jax.lax.Precision.HIGHEST
    support_ref = jnp.dot(x, wg, precision=hi)
    h_ref = jnp.maximum(jnp.dot(adj, support_ref, precision=hi) + bg, 0.0)
    ref = jnp.dot(h_ref, wm, precision=hi) + bm

    assert out.shape == (N, NCLASS), out.shape
    assert bool(jnp.all(jnp.isfinite(out))), "non-finite output"
    max_err = float(jnp.max(jnp.abs(out - ref)))
    assert max_err < 5e-2, f"max abs error vs f32 reference too large: {max_err}"
    print("KERNEL_OK")
</pallas_src>

<mosaic_0001>
module attributes {stable_mosaic.version = 11 : i64} {
  func.func @gcn_classifier_kernel(%arg0: i32, %arg1: memref<256x32xf32, #tpu.memory_space<vmem>>, %arg2: memref<128x256xf32, #tpu.memory_space<vmem>>, %arg3: memref<32x128xf32, #tpu.memory_space<vmem>>, %arg4: memref<1x128xf32, #tpu.memory_space<vmem>>, %arg5: memref<128x128xf32, #tpu.memory_space<vmem>>, %arg6: memref<1x128xf32, #tpu.memory_space<vmem>>, %arg7: memref<128x128xf32, #tpu.memory_space<vmem>>) attributes {dimension_semantics = [#tpu.dimension_semantics<parallel>], iteration_bounds = array<i64: 2>, scalar_prefetch = 0 : i64, scratch_operands = 0 : i64, tpu.core_type = #tpu.core_type<tc>, window_params = [{pipeline_mode = #tpu.pipeline_mode<synchronous>, transform_indices = @transform_0, window_bounds = array<i64: 256, 32>}, {transform_indices = @transform_1, window_bounds = array<i64: 128, 256>}, {pipeline_mode = #tpu.pipeline_mode<synchronous>, transform_indices = @transform_2, window_bounds = array<i64: 32, 128>}, {pipeline_mode = #tpu.pipeline_mode<synchronous>, transform_indices = @transform_3, window_bounds = array<i64: 1, 128>}, {pipeline_mode = #tpu.pipeline_mode<synchronous>, transform_indices = @transform_4, window_bounds = array<i64: 128, 128>}, {pipeline_mode = #tpu.pipeline_mode<synchronous>, transform_indices = @transform_5, window_bounds = array<i64: 1, 128>}, {transform_indices = @transform_6, window_bounds = array<i64: 128, 128>}]} {
    %c0 = arith.constant 0 : index
    %c0_0 = arith.constant 0 : index
    %0 = vector.load %arg1[%c0, %c0_0] : memref<256x32xf32, #tpu.memory_space<vmem>>, vector<256x32xf32>
    %1 = arith.truncf %0 : vector<256x32xf32> to vector<256x32xbf16>
    %c0_1 = arith.constant 0 : index
    %c0_2 = arith.constant 0 : index
    %2 = vector.load %arg3[%c0_1, %c0_2] : memref<32x128xf32, #tpu.memory_space<vmem>>, vector<32x128xf32>
    %3 = arith.truncf %2 : vector<32x128xf32> to vector<32x128xbf16>
    %cst = arith.constant dense<0.000000e+00> : vector<256x128xf32>
    %4 = tpu.matmul %1, %3, %cst {dimension_numbers = #tpu.dot_dimension_numbers<[1], [0], [0], [1], [0, 0, 1, 1], [], []>} : vector<256x32xbf16>, vector<32x128xbf16>, vector<256x128xf32> -> vector<256x128xf32>
    %c0_3 = arith.constant 0 : index
    %c0_4 = arith.constant 0 : index
    %5 = vector.load %arg2[%c0_3, %c0_4] : memref<128x256xf32, #tpu.memory_space<vmem>>, vector<128x256xf32>
    %6 = arith.truncf %5 : vector<128x256xf32> to vector<128x256xbf16>
    %7 = arith.truncf %4 : vector<256x128xf32> to vector<256x128xbf16>
    %cst_5 = arith.constant dense<0.000000e+00> : vector<128x128xf32>
    %8 = tpu.matmul %6, %7, %cst_5 {dimension_numbers = #tpu.dot_dimension_numbers<[1], [0], [0], [1], [0, 0, 1, 1], [], []>} : vector<128x256xbf16>, vector<256x128xbf16>, vector<128x128xf32> -> vector<128x128xf32>
    %c0_6 = arith.constant 0 : index
    %c0_7 = arith.constant 0 : index
    %9 = vector.load %arg4[%c0_6, %c0_7] : memref<1x128xf32, #tpu.memory_space<vmem>>, vector<1x128xf32>
    %10 = vector.broadcast %9 : vector<1x128xf32> to vector<128x128xf32>
    %11 = arith.addf %8, %10 : vector<128x128xf32>
    %cst_8 = arith.constant 0.000000e+00 : f32
    %12 = vector.broadcast %cst_8 : f32 to vector<128x128xf32>
    %13 = arith.maximumf %11, %12 : vector<128x128xf32>
    %14 = arith.truncf %13 : vector<128x128xf32> to vector<128x128xbf16>
    %c0_9 = arith.constant 0 : index
    %c0_10 = arith.constant 0 : index
    %15 = vector.load %arg5[%c0_9, %c0_10] : memref<128x128xf32, #tpu.memory_space<vmem>>, vector<128x128xf32>
    %16 = arith.truncf %15 : vector<128x128xf32> to vector<128x128xbf16>
    %cst_11 = arith.constant dense<0.000000e+00> : vector<128x128xf32>
    %17 = tpu.matmul %14, %16, %cst_11 {dimension_numbers = #tpu.dot_dimension_numbers<[1], [0], [0], [1], [0, 0, 1, 1], [], []>} : vector<128x128xbf16>, vector<128x128xbf16>, vector<128x128xf32> -> vector<128x128xf32>
    %c0_12 = arith.constant 0 : index
    %c0_13 = arith.constant 0 : index
    %18 = vector.load %arg6[%c0_12, %c0_13] : memref<1x128xf32, #tpu.memory_space<vmem>>, vector<1x128xf32>
    %19 = vector.broadcast %18 : vector<1x128xf32> to vector<128x128xf32>
    %20 = arith.addf %17, %19 : vector<128x128xf32>
    %c0_14 = arith.constant 0 : index
    %c0_15 = arith.constant 0 : index
    %21 = vector.load %arg7[%c0_14, %c0_15] : memref<128x128xf32, #tpu.memory_space<vmem>>, vector<128x128xf32>
    tpu.vector_store %arg7[%c0_14, %c0_15], %20 {strides = array<i32>} : memref<128x128xf32, #tpu.memory_space<vmem>>, vector<128x128xf32>,
    return
  }
  func.func @transform_0(%arg0: i32) -> (i32, i32) {
    %c0_i32 = arith.constant 0 : i32
    %c0_i32_0 = arith.constant 0 : i32
    %c0_i32_1 = arith.constant 0 : i32
    return %c0_i32, %c0_i32_0 : i32, i32
  }
  func.func @transform_1(%arg0: i32) -> (i32, i32) {
    %c0_i32 = arith.constant 0 : i32
    %c0_i32_0 = arith.constant 0 : i32
    return %arg0, %c0_i32 : i32, i32
  }
  func.func @transform_2(%arg0: i32) -> (i32, i32) {
    %c0_i32 = arith.constant 0 : i32
    %c0_i32_0 = arith.constant 0 : i32
    %c0_i32_1 = arith.constant 0 : i32
    return %c0_i32, %c0_i32_0 : i32, i32
  }
  func.func @transform_3(%arg0: i32) -> (i32, i32) {
    %c0_i32 = arith.constant 0 : i32
    %c0_i32_0 = arith.constant 0 : i32
    %c0_i32_1 = arith.constant 0 : i32
    return %c0_i32, %c0_i32_0 : i32, i32
  }
  func.func @transform_4(%arg0: i32) -> (i32, i32) {
    %c0_i32 = arith.constant 0 : i32
    %c0_i32_0 = arith.constant 0 : i32
    %c0_i32_1 = arith.constant 0 : i32
    return %c0_i32, %c0_i32_0 : i32, i32
  }
  func.func @transform_5(%arg0: i32) -> (i32, i32) {
    %c0_i32 = arith.constant 0 : i32
    %c0_i32_0 = arith.constant 0 : i32
    %c0_i32_1 = arith.constant 0 : i32
    return %c0_i32, %c0_i32_0 : i32, i32
  }
  func.func @transform_6(%arg0: i32) -> (i32, i32) {
    %c0_i32 = arith.constant 0 : i32
    %c0_i32_0 = arith.constant 0 : i32
    return %arg0, %c0_i32 : i32, i32
  }
}

</mosaic_0001>

<bundles_post_ra>
// kernel: gcn_classifier_forward.1
= control target key start
LH: loop header
LB: loop body
LE: loop exit
PB: predicated region body
PF: predicated region fallthrough
CT: control target
= control target key end

     0   :  { %s1163_s21 = smov 0   ;;  %s1461_s0 = inlined_call_operand.vmem [shape: f32[256,32], index: 0, kind: input, shape index: {}]   ;;  %s1462_s1 = inlined_call_operand.vmem [shape: f32[256,256], index: 1, kind: input, shape index: {}]   ;;  %s1463_s2 = inlined_call_operand.vmem [shape: f32[32,128], index: 2, kind: input, shape index: {}]   ;;  %s1464_s3 = inlined_call_operand.vmem [shape: f32[1,128], index: 3, kind: input, shape index: {}]   ;;  %s1465_s4 = inlined_call_operand.vmem [shape: f32[128,128], index: 4, kind: input, shape index: {}]   ;;  %s1466_s5 = inlined_call_operand.vmem [shape: f32[1,128], index: 5, kind: input, shape index: {}]   ;;  %s1467_s6 = inlined_call_operand.vmem [shape: f32[256,128], index: 6, kind: output, shape index: {}]  }
   0x1 LB: > { %s915_s22 = sadd.s32 4294967295, %s1126_s21   ;;  %p919_p0 = scmp.ge.s32.totalorder %s1126_s21, 1  ;;  %s1126_s21 = sphi %s1163_s21, %s16_s21  }
   0x2   : > { %p214_p1 = scmp.lt.s32.totalorder %s1126_s21, 3 }
   0x4   : > { %p215_p2 = pnand %p919_p0, %p214_p1 }
   0x5   : > { %s920_s29 = sshll.u32 (!%p215_p2), %s915_s22, 4 }
   0x6   : > { %218 = sbr.rel (%p215_p2) target bundleno = 774 (0x306), region = 44  ;;  %p246_p3 = scmp.lt.s32.totalorder (!%p215_p2), %s920_s29, 31 }
   0xb   : > { %v309_v0 = vld [vmem:[%s1463_s2 + $0x10] sm:$0xff]  ;;  %v310_v1 = vld [vmem:[%s1463_s2 + $0x18] sm:$0xff]  ;;  %v307_v2 = vld [vmem:[%s1463_s2] sm:$0xff]  ;;  %vm313_vm0 = vcmask 261120   ;;  %s1469_s29 = smov (!%p246_p3, %s920_s29), 31 }
   0xc   : > { %v312_v3 = vpack.c.bf16 %v310_v1, %v309_v0  ;;  %v308_v4 = vld [vmem:[%s1463_s2 + $0x8] sm:$0xff]  ;;  %v259_v5 = vld [vmem:[%s1461_s0] sm:$0xff]  ;;  %v261_v9 = vld [vmem:[%s1461_s0 + $0x10] sm:$0xff]  ;;  %s945_s30 = sshll.u32 %s1469_s29, 4  ;;  %s924_s23 = sshll.u32 %s1469_s29, 3 }
   0xd   : > { %v260_v6 = vld [vmem:[%s1461_s0 + $0x8] sm:$0xff]  ;;  %v311_v7 = vpack.c.bf16 %v308_v4, %v307_v2  ;;  %v262_v10 = vld [vmem:[%s1461_s0 + $0x18] sm:$0xff]  ;;  %v263_v11 = vld [vmem:[%s1461_s0 + $0x20] sm:$0xff]  ;;  %s1303_s9 = scalar_lea.vmem %s1462_s1, %s945_s30  ;;  %s1440_s28 = scalar_lea.vmem %s1467_s6, %s924_s23 }
   0xe   : > { %v291_v8 = vpack.c.bf16 %v260_v6, %v259_v5  ;;  %1044 = vmatprep.subr.bf16.mxu0 %v312_v3  ;;  %v264_v12 = vld [vmem:[%s1461_s0 + $0x28] sm:$0xff]  ;;  %v292_v13 = vpack.c.bf16 %v262_v10, %v261_v9  ;;  %v265_v15 = vld [vmem:[%s1461_s0 + $0x30] sm:$0xff]  ;;  %v266_v16 = vld [vmem:[%s1461_s0 + $0x38] sm:$0xff] }
   0xf   : > { %1045 = vmatpush3.bf16.msra.mxu0 %v312_v3  ;;  %v293_v14 = vpack.c.bf16 %v264_v12, %v263_v11  ;;  %v267_v17 = vld [vmem:[%s1461_s0 + $0x40] sm:$0xff]  ;;  %v268_v18 = vld [vmem:[%s1461_s0 + $0x48] sm:$0xff]  ;;  %v294_v19 = vpack.c.bf16 %v266_v16, %v265_v15  ;;  %v269_v21 = vld [vmem:[%s1461_s0 + $0x50] sm:$0xff] }
  0x10   : > { %1048 = vmatprep.mubr.msk.bf16.mxu0 %vm313_vm0, %v291_v8  ;;  %1046 = vmatprep.subr.bf16.mxu0 %v311_v7  ;;  %v295_v20 = vpack.c.bf16 %v268_v18, %v267_v17  ;;  %v270_v22 = vld [vmem:[%s1461_s0 + $0x58] sm:$0xff]  ;;  %v271_v23 = vld [vmem:[%s1461_s0 + $0x60] sm:$0xff]  ;;  %v272_v24 = vld [vmem:[%s1461_s0 + $0x68] sm:$0xff] }
  0x11   : > { %v296_v25 = vpack.c.bf16 %v270_v22, %v269_v21  ;;  %v297_v26 = vpack.c.bf16 %v272_v24, %v271_v23  ;;  %v273_v27 = vld [vmem:[%s1461_s0 + $0x70] sm:$0xff]  ;;  %v274_v28 = vld [vmem:[%s1461_s0 + $0x78] sm:$0xff]  ;;  %v275_v29 = vld [vmem:[%s1461_s0 + $0x80] sm:$0xff] }
  0x12   : > { %v276_v30 = vld [vmem:[%s1461_s0 + $0x88] sm:$0xff]  ;;  %v298_v31 = vpack.c.bf16 %v274_v28, %v273_v27  ;;  %v277_v33 = vld [vmem:[%s1461_s0 + $0x90] sm:$0xff]  ;;  %v278_v34 = vld [vmem:[%s1461_s0 + $0x98] sm:$0xff] }
  0x13   : > { %1047 = vmatpush3.bf16.msra.mxu0 %v311_v7  ;;  %v299_v32 = vpack.c.bf16 %v276_v30, %v275_v29  ;;  %v279_v35 = vld [vmem:[%s1461_s0 + $0xa0] sm:$0xff]  ;;  %v280_v36 = vld [vmem:[%s1461_s0 + $0xa8] sm:$0xff]  ;;  %v300_v37 = vpack.c.bf16 %v278_v34, %v277_v33  ;;  %v281_v39 = vld [vmem:[%s1461_s0 + $0xb0] sm:$0xff] }
  0x14   : > { %v301_v38 = vpack.c.bf16 %v280_v36, %v279_v35  ;;  %v282_v40 = vld [vmem:[%s1461_s0 + $0xb8] sm:$0xff]  ;;  %v283_v41 = vld [vmem:[%s1461_s0 + $0xc0] sm:$0xff]  ;;  %v284_v42 = vld [vmem:[%s1461_s0 + $0xc8] sm:$0xff] }
  0x15   : > { %v302_v43 = vpack.c.bf16 %v282_v40, %v281_v39  ;;  %v303_v44 = vpack.c.bf16 %v284_v42, %v283_v41  ;;  %v285_v45 = vld [vmem:[%s1461_s0 + $0xd0] sm:$0xff]  ;;  %v286_v46 = vld [vmem:[%s1461_s0 + $0xd8] sm:$0xff]  ;;  %v287_v47 = vld [vmem:[%s1461_s0 + $0xe0] sm:$0xff] }
  0x16   : > { %1049 = vmatmul.mubr.msk.bf16.vlgmr.msra.gmra.mxu0 %vm313_vm0, %v292_v13  ;;  %v288_v48 = vld [vmem:[%s1461_s0 + $0xe8] sm:$0xff]  ;;  %v304_v49 = vpack.c.bf16 %v286_v46, %v285_v45  ;;  %v289_v51 = vld [vmem:[%s1461_s0 + $0xf0] sm:$0xff]  ;;  %v290_v52 = vld [vmem:[%s1461_s0 + $0xf8] sm:$0xff] }
  0x17   : > { %1052 = vmatprep.mubr.msk.bf16.mxu0 %vm313_vm0, %v293_v14  ;;  %v305_v50 = vpack.c.bf16 %v288_v48, %v287_v47  ;;  %v306_v53 = vpack.c.bf16 %v290_v52, %v289_v51  ;;  %v524_v54 = vld [vmem:[%s1303_s9 + $0x8] sm:$0xff]  ;;  %v526_v55 = vld [vmem:[%s1303_s9 + $0x18] sm:$0xff]  ;;  %v729_v9 = vld [vmem:[%s1465_s4 + $0x70] sm:$0xff] }
  0x18   : > { %v556_v56 = vpack.c.bf16 %v526_v55, %v524_v54  ;;  %v730_v10 = vld [vmem:[%s1465_s4 + $0x78] sm:$0xff]  ;;  %v727_v11 = vld [vmem:[%s1465_s4 + $0x60] sm:$0xff]  ;;  %v728_v14 = vld [vmem:[%s1465_s4 + $0x68] sm:$0xff] }
  0x19   : > { %v738_v13 = vpack.c.bf16 %v730_v10, %v729_v9  ;;  %v737_v15 = vpack.c.bf16 %v728_v14, %v727_v11  ;;  %v725_v16 = vld [vmem:[%s1465_s4 + $0x50] sm:$0xff]  ;;  %v726_v17 = vld [vmem:[%s1465_s4 + $0x58] sm:$0xff]  ;;  %v528_v52 = vld [vmem:[%s1303_s9 + $0x28] sm:$0xff] }
  0x1a   : > { %626 = vmatprep.mubr.bf16.mxu1 %v556_v56  ;;  %v525_v51 = vld [vmem:[%s1303_s9 + $0x10] sm:$0xff]  ;;  %v527_v56 = vld [vmem:[%s1303_s9 + $0x20] sm:$0xff] }
  0x1b   : > { %1080 = vmatprep.subr.bf16.mxu0 %v738_v13  ;;  %v539_v10 = vld [vmem:[%s1303_s9 + $0x80] sm:$0xff]  ;;  %v541_v11 = vld [vmem:[%s1303_s9 + $0x90] sm:$0xff] }
  0x1c   : > { %1081 = vmatpush3.bf16.msra.mxu0 %v738_v13  ;;  %v546_v13 = vld [vmem:[%s1303_s9 + $0xb8] sm:$0xff]  ;;  %v563_v14 = vpack.c.bf16 %v541_v11, %v539_v10 }
  0x1d   : > { %1082 = vmatprep.subr.bf16.mxu0 %v737_v15 }
  0x1e   : > { %1053 = vmatmul.mubr.msk.bf16.gmra.mxu0 %vm313_vm0, %v294_v19 }
  0x1f   : > { %1056 = vmatprep.mubr.msk.bf16.mxu0 %vm313_vm0, %v295_v20  ;;  %v736_v20 = vpack.c.bf16 %v726_v17, %v725_v16  ;;  %v543_v16 = vld [vmem:[%s1303_s9 + $0xa0] sm:$0xff]  ;;  %v545_v17 = vld [vmem:[%s1303_s9 + $0xb0] sm:$0xff] }
  0x20   : > { %1083 = vmatpush3.bf16.msra.mxu0 %v737_v15 }
  0x21   : > { %1084 = vmatprep.subr.bf16.mxu0 %v736_v20 }
  0x24   : > { %1085 = vmatpush3.bf16.msra.mxu0 %v736_v20  ;;  %v565_v20 = vpack.c.bf16 %v545_v17, %v543_v16 }
  0x26   : > { %1057 = vmatmul.mubr.msk.bf16.gmra.mxu0 %vm313_vm0, %v296_v25 }
  0x27   : > { %1060 = vmatprep.mubr.msk.bf16.mxu0 %vm313_vm0, %v297_v26 }
  0x2e   : > { %1061 = vmatmul.mubr.msk.bf16.gmra.mxu0 %vm313_vm0, %v298_v31 }
  0x2f   : > { %1064 = vmatprep.mubr.msk.bf16.mxu0 %vm313_vm0, %v299_v32 }
  0x36   : > { %1065 = vmatmul.mubr.msk.bf16.gmra.mxu0 %vm313_vm0, %v300_v37 }
  0x37   : > { %1068 = vmatprep.mubr.msk.bf16.mxu0 %vm313_vm0, %v301_v38 }
  0x3e   : > { %1069 = vmatmul.mubr.msk.bf16.gmra.mxu0 %vm313_vm0, %v302_v43 }
  0x3f   : > { %1072 = vmatprep.mubr.msk.bf16.mxu0 %vm313_vm0, %v303_v44 }
  0x46   : > { %1073 = vmatmul.mubr.msk.bf16.gmra.mxu0 %vm313_vm0, %v304_v49 }
  0x47   : > { %1076 = vmatprep.mubr.msk.bf16.mxu0 %vm313_vm0, %v305_v50  ;;  %v523_v50 = vld [vmem:[%s1303_s9] sm:$0xff] }
  0x48   : > { %v555_v54 = vpack.c.bf16 %v525_v51, %v523_v50 }
  0x4e   : > { %1077 = vmatmul.mubr.msk.bf16.gmra.mxu0 %vm313_vm0, %v306_v53  ;;  %v530_v53 = vld [vmem:[%s1303_s9 + $0x38] sm:$0xff] }
  0x4f   : > { %v558_v55 = vpack.c.bf16 %v530_v53, %v528_v52 }
  0xd6   : > { %v1307_v57 = vpop.f32.mrf.mxu0 }
  0xd8   : > { %v1309_v58 = vpop.f32.mrf.mxu0 }
  0xda   : > { %v1311_v59 = vpop.f32.mrf.mxu0 }
  0xdb   : > { %v572_v60 = vpack.c.bf16 %v1311_v59, %v1307_v57  ;;  %v529_v57 = vld [vmem:[%s1303_s9 + $0x30] sm:$0xff]  ;;  %v532_v59 = vld [vmem:[%s1303_s9 + $0x48] sm:$0xff] }
  0xdc   : > { %v1315_v61 = vpop.f32.mrf.mxu0 }
  0xdd   : > { %v571_v62 = vpack.c.bf16 %v1315_v61, %v1309_v58  ;;  %v533_v58 = vld [vmem:[%s1303_s9 + $0x50] sm:$0xff]  ;;  %v536_v61 = vld [vmem:[%s1303_s9 + $0x68] sm:$0xff] }
  0xde   : > { %v1319_v63 = vpop.f32.mrf.mxu0 }
  0xe0   : > { %v1321_v0 = vpop.f32.mrf.mxu0 }
  0xe2   : > { %v1055_v1 = vpop.f32.mrf.mxu0 }
  0xe3   : > { %v574_v2 = vpack.c.bf16 %v1055_v1, %v1319_v63  ;;  %v557_v63 = vpack.c.bf16 %v529_v57, %v527_v56  ;;  %v531_v1 = vld [vmem:[%s1303_s9 + $0x40] sm:$0xff] }
  0xe4   : > { %v1324_v3 = vpop.f32.mrf.mxu0 }
  0xe5   : > { %v573_v4 = vpack.c.bf16 %v1324_v3, %v1321_v0 }
  0xe6   : > { %v1058_v5 = vpop.f32.mrf.mxu0 }
  0xe8   : > { %v428_v6 = vpop.f32.mrf.mxu0 }
  0xea   : > { %v1059_v7 = vpop.f32.mrf.mxu0 }
  0xeb   : > { %v576_v43 = vpack.c.bf16 %v1059_v7, %v1058_v5  ;;  %v537_v5 = vld [vmem:[%s1303_s9 + $0x70] sm:$0xff]  ;;  %v542_v7 = vld [vmem:[%s1303_s9 + $0x98] sm:$0xff] }
  0xec   : > { %v431_v8 = vpop.f32.mrf.mxu0 }
  0xed   : > { %v575_v45 = vpack.c.bf16 %v431_v8, %v428_v6  ;;  %v540_v6 = vld [vmem:[%s1303_s9 + $0x88] sm:$0xff] }
  0xee   : > { %v1062_v12 = vpop.f32.mrf.mxu0  ;;  %v564_v9 = vpack.c.bf16 %v542_v7, %v540_v6 }
  0xf0   : > { %v444_v18 = vpop.f32.mrf.mxu0 }
  0xf2   : > { %v1063_v19 = vpop.f32.mrf.mxu0 }
  0xf3   : > { %v578_v38 = vpack.c.bf16 %v1063_v19, %v1062_v12  ;;  %v544_v12 = vld [vmem:[%s1303_s9 + $0xa8] sm:$0xff]  ;;  %v550_v19 = vld [vmem:[%s1303_s9 + $0xd8] sm:$0xff] }
  0xf4   : > { %v447_v21 = vpop.f32.mrf.mxu0  ;;  %v566_v15 = vpack.c.bf16 %v546_v13, %v544_v12 }
  0xf5   : > { %v577_v41 = vpack.c.bf16 %v447_v21, %v444_v18  ;;  %v548_v18 = vld [vmem:[%s1303_s9 + $0xc8] sm:$0xff] }
  0xf6   : > { %v1066_v22 = vpop.f32.mrf.mxu0  ;;  %v568_v21 = vpack.c.bf16 %v550_v19, %v548_v18 }
  0xf8   : > { %v460_v23 = vpop.f32.mrf.mxu0 }
  0xfa   : > { %v1067_v24 = vpop.f32.mrf.mxu0 }
  0xfb   : > { %v580_v48 = vpack.c.bf16 %v1067_v24, %v1066_v22  ;;  %v547_v22 = vld [vmem:[%s1303_s9 + $0xc0] sm:$0xff]  ;;  %v552_v24 = vld [vmem:[%s1303_s9 + $0xe8] sm:$0xff] }
  0xfc   : > { %v463_v25 = vpop.f32.mrf.mxu0 }
  0xfd   : > { %v579_v49 = vpack.c.bf16 %v463_v25, %v460_v23  ;;  %v549_v23 = vld [vmem:[%s1303_s9 + $0xd0] sm:$0xff]  ;;  %v554_v25 = vld [vmem:[%s1303_s9 + $0xf8] sm:$0xff] }
  0xfe   : > { %v1070_v26 = vpop.f32.mrf.mxu0 }
 0x100   : > { %v476_v27 = vpop.f32.mrf.mxu0 }
 0x102   : > { %v1071_v28 = vpop.f32.mrf.mxu0 }
 0x103   : > { %v582_v46 = vpack.c.bf16 %v1071_v28, %v1070_v26  ;;  %v567_v26 = vpack.c.bf16 %v549_v23, %v547_v22  ;;  %v551_v28 = vld [vmem:[%s1303_s9 + $0xe0] sm:$0xff] }
 0x104   : > { %v479_v29 = vpop.f32.mrf.mxu0 }
 0x105   : > { %v581_v47 = vpack.c.bf16 %v479_v29, %v476_v27  ;;  %v570_v27 = vpack.c.bf16 %v554_v25, %v552_v24  ;;  %v553_v29 = vld [vmem:[%s1303_s9 + $0xf0] sm:$0xff] }
 0x106   : > { %v1074_v30 = vpop.f32.mrf.mxu0 }
 0x108   : > { %v492_v31 = vpop.f32.mrf.mxu0 }
 0x10a   : > { %v1075_v32 = vpop.f32.mrf.mxu0 }
 0x10b   : > { %v584_v42 = vpack.c.bf16 %v1075_v32, %v1074_v30  ;;  %v569_v30 = vpack.c.bf16 %v553_v29, %v551_v28  ;;  %v724_v32 = vld [vmem:[%s1465_s4 + $0x48] sm:$0xff] }
 0x10c   : > { %v495_v33 = vpop.f32.mrf.mxu0 }
 0x10d   : > { %v583_v44 = vpack.c.bf16 %v495_v33, %v492_v31  ;;  %v723_v31 = vld [vmem:[%s1465_s4 + $0x40] sm:$0xff] }
 0x10e   : > { %v1078_v34 = vpop.f32.mrf.mxu0  ;;  %v735_v33 = vpack.c.bf16 %v724_v32, %v723_v31 }
 0x110   : > { %v508_v35 = vpop.f32.mrf.mxu0  ;;  %1086 = vmatprep.subr.bf16.mxu0 %v735_v33 }
 0x111   : > { %1087 = vmatpush3.bf16.msra.mxu0 %v735_v33 }
 0x112   : > { %v1079_v36 = vpop.f32.mrf.mxu0 }
 0x113   : > { %v586_v37 = vpack.c.bf16 %v1079_v36, %v1078_v34  ;;  %v721_v34 = vld [vmem:[%s1465_s4 + $0x30] sm:$0xff] }
 0x114   : > { %v511_v39 = vpop.f32.mrf.mxu0 }
 0x115   : > { %v585_v40 = vpack.c.bf16 %v511_v39, %v508_v35  ;;  %964 = vmatprep.subr.bf16.mxu1 %v586_v37  ;;  %v722_v35 = vld [vmem:[%s1465_s4 + $0x38] sm:$0xff]  ;;  %v719_v37 = vld [vmem:[%s1465_s4 + $0x20] sm:$0xff] }
 0x116   : > { %965 = vmatpush3.bf16.msra.mxu1 %v578_v38  ;;  %v734_v36 = vpack.c.bf16 %v722_v35, %v721_v34  ;;  %v720_v38 = vld [vmem:[%s1465_s4 + $0x28] sm:$0xff] }
 0x117   : > { %966 = vmatprep.subr.bf16.mxu1 %v585_v40  ;;  %v733_v39 = vpack.c.bf16 %v720_v38, %v719_v37  ;;  %v717_v40 = vld [vmem:[%s1465_s4 + $0x10] sm:$0xff] }
 0x118   : > { %1088 = vmatprep.subr.bf16.mxu0 %v734_v36 }
 0x119   : > { %1089 = vmatpush3.bf16.msra.mxu0 %v734_v36 }
 0x11a   : > { %967 = vmatpush3.bf16.msra.mxu1 %v577_v41  ;;  %1090 = vmatprep.subr.bf16.mxu0 %v733_v39  ;;  %v718_v41 = vld [vmem:[%s1465_s4 + $0x18] sm:$0xff] }
 0x11b   : > { %968 = vmatprep.subr.bf16.mxu1 %v584_v42  ;;  %v732_v42 = vpack.c.bf16 %v718_v41, %v717_v40 }
 0x11d   : > { %1091 = vmatpush3.bf16.msra.mxu0 %v733_v39 }
 0x11e   : > { %969 = vmatpush3.bf16.msra.mxu1 %v576_v43  ;;  %1092 = vmatprep.subr.bf16.mxu0 %v732_v42  ;;  %v715_v43 = vld [vmem:[%s1465_s4] sm:$0xff] }
 0x11f   : > { %970 = vmatprep.subr.bf16.mxu1 %v583_v44  ;;  %v716_v44 = vld [vmem:[%s1465_s4 + $0x8] sm:$0xff] }
 0x121   : > { %1093 = vmatpush3.bf16.msra.mxu0 %v732_v42 }
 0x122   : > { %971 = vmatpush3.bf16.msra.mxu1 %v575_v45  ;;  %v731_v45 = vpack.c.bf16 %v716_v44, %v715_v43 }
 0x123   : > { %972 = vmatprep.subr.bf16.mxu1 %v582_v46 }
 0x124   : > { %1094 = vmatprep.subr.bf16.mxu0 %v731_v45 }
 0x125   : > { %1095 = vmatpush3.bf16.msra.mxu0 %v731_v45 }
 0x126   : > { %973 = vmatpush3.bf16.msra.mxu1 %v574_v2  ;;  %v559_v2 = vpack.c.bf16 %v533_v58, %v531_v1 }
 0x127   : > { %974 = vmatprep.subr.bf16.mxu1 %v581_v47 }
 0x12a   : > { %975 = vmatpush3.bf16.msra.mxu1 %v573_v4  ;;  %v535_v4 = vld [vmem:[%s1303_s9 + $0x60] sm:$0xff] }
 0x12b   : > { %976 = vmatprep.subr.bf16.mxu1 %v580_v48  ;;  %v561_v8 = vpack.c.bf16 %v537_v5, %v535_v4 }
 0x12e   : > { %977 = vmatpush3.bf16.msra.mxu1 %v572_v60  ;;  %v534_v60 = vld [vmem:[%s1303_s9 + $0x58] sm:$0xff] }
 0x12f   : > { %978 = vmatprep.subr.bf16.mxu1 %v579_v49  ;;  %v560_v0 = vpack.c.bf16 %v534_v60, %v532_v59  ;;  %v1415_v49 = vld [vmem:[%s1464_s3] ss:$0 sm:$0xff] }
 0x132   : > { %979 = vmatpush3.bf16.msra.mxu1 %v571_v62  ;;  %v538_v62 = vld [vmem:[%s1303_s9 + $0x78] sm:$0xff] }
 0x133   : > { %v562_v3 = vpack.c.bf16 %v538_v62, %v536_v61 }
 0x135   : > { %627 = vmatmul.mubr.bf16.vlgmr.msra.gmra.mxu1 %v555_v54 }
 0x136   : > { %634 = vmatprep.mubr.bf16.mxu1 %v558_v55 }
 0x13d   : > { %635 = vmatmul.mubr.bf16.gmra.mxu1 %v557_v63 }
 0x13e   : > { %642 = vmatprep.mubr.bf16.mxu1 %v560_v0 }
 0x145   : > { %643 = vmatmul.mubr.bf16.gmra.mxu1 %v559_v2 }
 0x146   : > { %650 = vmatprep.mubr.bf16.mxu1 %v562_v3 }
 0x14d   : > { %651 = vmatmul.mubr.bf16.gmra.mxu1 %v561_v8 }
 0x14e   : > { %658 = vmatprep.mubr.bf16.mxu1 %v564_v9 }
 0x155   : > { %659 = vmatmul.mubr.bf16.gmra.mxu1 %v563_v14 }
 0x156   : > { %666 = vmatprep.mubr.bf16.mxu1 %v566_v15 }
 0x15d   : > { %667 = vmatmul.mubr.bf16.gmra.mxu1 %v565_v20 }
 0x15e   : > { %674 = vmatprep.mubr.bf16.mxu1 %v568_v21 }
 0x165   : > { %675 = vmatmul.mubr.bf16.gmra.mxu1 %v567_v26 }
 0x166   : > { %682 = vmatprep.mubr.bf16.mxu1 %v570_v27 }
 0x16d   : > { %683 = vmatmul.mubr.bf16.gmra.mxu1 %v569_v30 }
 0x1f5   : > { %v980_v46 = vpop.f32.mrf.mxu1 }
 0x1f7   : > { %v981_v47 = vpop.f32.mrf.mxu1 }
 0x1f8   : > { %v982_v48 = vadd.f32 %v981_v47, %v980_v46 }
 0x1f9   : > { %v983_v50 = vpop.f32.mrf.mxu1 }
 0x1fa   : > { %v629_v52 = vadd.f32 %v982_v48, %v1415_v49 }
 0x1fb   : > { %v984_v51 = vpop.f32.mrf.mxu1 }
 0x1fc   : > { %v985_v53 = vadd.f32 %v984_v51, %v983_v50  ;;  %v691_v57 = vmax.f32 %v629_v52, 0.0 }
 0x1fd   : > { %v986_v54 = vpop.f32.mrf.mxu1 }
 0x1fe   : > { %v632_v55 = vadd.f32 %v985_v53, %v1415_v49 }
 0x1ff   : > { %v987_v56 = vpop.f32.mrf.mxu1 }
 0x200   : > { %v692_v59 = vmax.f32 %v632_v55, 0.0  ;;  %v988_v60 = vadd.f32 %v987_v56, %v986_v54 }
 0x201   : > { %v989_v63 = vpop.f32.mrf.mxu1 }
 0x202   : > { %v707_v0 = vpack.c.bf16 %v692_v59, %v691_v57  ;;  %v637_v58 = vadd.f32 %v988_v60, %v1415_v49 }
 0x203   : > { %v990_v1 = vpop.f32.mrf.mxu1 }
 0x204   : > { %v991_v61 = vadd.f32 %v990_v1, %v989_v63  ;;  %1096 = vmatprep.mubr.bf16.mxu0 %v707_v0  ;;  %v693_v4 = vmax.f32 %v637_v58, 0.0 }
 0x205   : > { %v992_v62 = vpop.f32.mrf.mxu1 }
 0x206   : > { %v640_v2 = vadd.f32 %v991_v61, %v1415_v49 }
 0x207   : > { %v993_v3 = vpop.f32.mrf.mxu1 }
 0x208   : > { %v694_v5 = vmax.f32 %v640_v2, 0.0  ;;  %v994_v6 = vadd.f32 %v993_v3, %v992_v62 }
 0x209   : > { %v995_v7 = vpop.f32.mrf.mxu1 }
 0x20a   : > { %v708_v8 = vpack.c.bf16 %v694_v5, %v693_v4  ;;  %v645_v10 = vadd.f32 %v994_v6, %v1415_v49 }
 0x20b   : > { %v996_v9 = vpop.f32.mrf.mxu1 }
 0x20c   : > { %v997_v11 = vadd.f32 %v996_v9, %v995_v7  ;;  %1097 = vmatmul.mubr.bf16.vlgmr.msra.gmra.mxu0 %v708_v8  ;;  %v695_v15 = vmax.f32 %v645_v10, 0.0  ;;  %v942_v8 = vld [vmem:[%s1466_s5] ss:$0 sm:$0xff] }
 0x20d   : > { %v998_v12 = vpop.f32.mrf.mxu1 }
 0x20e   : > { %v648_v13 = vadd.f32 %v997_v11, %v1415_v49 }
 0x20f   : > { %v999_v14 = vpop.f32.mrf.mxu1 }
 0x210   : > { %v696_v16 = vmax.f32 %v648_v13, 0.0  ;;  %v1000_v17 = vadd.f32 %v999_v14, %v998_v12 }
 0x211   : > { %v1001_v18 = vpop.f32.mrf.mxu1 }
 0x212   : > { %v709_v19 = vpack.c.bf16 %v696_v16, %v695_v15  ;;  %v653_v21 = vadd.f32 %v1000_v17, %v1415_v49 }
 0x213   : > { %v1002_v20 = vpop.f32.mrf.mxu1 }
 0x214   : > { %v1003_v22 = vadd.f32 %v1002_v20, %v1001_v18  ;;  %1100 = vmatprep.mubr.bf16.mxu0 %v709_v19  ;;  %v697_v26 = vmax.f32 %v653_v21, 0.0 }
 0x215   : > { %v1004_v23 = vpop.f32.mrf.mxu1 }
 0x216   : > { %v656_v24 = vadd.f32 %v1003_v22, %v1415_v49 }
 0x217   : > { %v1005_v25 = vpop.f32.mrf.mxu1 }
 0x218   : > { %v698_v27 = vmax.f32 %v656_v24, 0.0  ;;  %v1006_v28 = vadd.f32 %v1005_v25, %v1004_v23 }
 0x219   : > { %v1007_v29 = vpop.f32.mrf.mxu1 }
 0x21a   : > { %v710_v30 = vpack.c.bf16 %v698_v27, %v697_v26  ;;  %v661_v32 = vadd.f32 %v1006_v28, %v1415_v49 }
 0x21b   : > { %v1008_v31 = vpop.f32.mrf.mxu1 }
 0x21c   : > { %v1009_v33 = vadd.f32 %v1008_v31, %v1007_v29  ;;  %1101 = vmatmul.mubr.bf16.gmra.mxu0 %v710_v30  ;;  %v699_v37 = vmax.f32 %v661_v32, 0.0 }
 0x21d   : > { %v1010_v34 = vpop.f32.mrf.mxu1 }
 0x21e   : > { %v664_v35 = vadd.f32 %v1009_v33, %v1415_v49 }
 0x21f   : > { %v1011_v36 = vpop.f32.mrf.mxu1 }
 0x220   : > { %v700_v38 = vmax.f32 %v664_v35, 0.0  ;;  %v1012_v39 = vadd.f32 %v1011_v36, %v1010_v34 }
 0x221   : > { %v1013_v40 = vpop.f32.mrf.mxu1 }
 0x222   : > { %v711_v41 = vpack.c.bf16 %v700_v38, %v699_v37  ;;  %v669_v43 = vadd.f32 %v1012_v39, %v1415_v49 }
 0x223   : > { %v1014_v42 = vpop.f32.mrf.mxu1 }
 0x224   : > { %v1015_v44 = vadd.f32 %v1014_v42, %v1013_v40  ;;  %1104 = vmatprep.mubr.bf16.mxu0 %v711_v41  ;;  %v701_v48 = vmax.f32 %v669_v43, 0.0 }
 0x225   : > { %v1016_v45 = vpop.f32.mrf.mxu1 }
 0x226   : > { %v672_v46 = vadd.f32 %v1015_v44, %v1415_v49 }
 0x227   : > { %v1017_v47 = vpop.f32.mrf.mxu1 }
 0x228   : > { %v702_v50 = vmax.f32 %v672_v46, 0.0  ;;  %v1018_v51 = vadd.f32 %v1017_v47, %v1016_v45 }
 0x229   : > { %v1019_v52 = vpop.f32.mrf.mxu1 }
 0x22a   : > { %v712_v53 = vpack.c.bf16 %v702_v50, %v701_v48  ;;  %v677_v55 = vadd.f32 %v1018_v51, %v1415_v49 }
 0x22b   : > { %v1020_v54 = vpop.f32.mrf.mxu1 }
 0x22c   : > { %v1021_v56 = vadd.f32 %v1020_v54, %v1019_v52  ;;  %1105 = vmatmul.mubr.bf16.gmra.mxu0 %v712_v53  ;;  %v703_v63 = vmax.f32 %v677_v55, 0.0 }
 0x22d   : > { %v1022_v57 = vpop.f32.mrf.mxu1 }
 0x22e   : > { %v680_v59 = vadd.f32 %v1021_v56, %v1415_v49 }
 0x22f   : > { %v1023_v60 = vpop.f32.mrf.mxu1 }
 0x230   : > { %v704_v0 = vmax.f32 %v680_v59, 0.0  ;;  %v1024_v1 = vadd.f32 %v1023_v60, %v1022_v57 }
 0x231   : > { %v1025_v58 = vpop.f32.mrf.mxu1 }
 0x232   : > { %v713_v61 = vpack.c.bf16 %v704_v0, %v703_v63  ;;  %v685_v2 = vadd.f32 %v1024_v1, %v1415_v49 }
 0x233   : > { %v1026_v62 = vpop.f32.mrf.mxu1 }
 0x234   : > { %v1027_v3 = vadd.f32 %v1026_v62, %v1025_v58  ;;  %1108 = vmatprep.mubr.bf16.mxu0 %v713_v61  ;;  %v705_v5 = vmax.f32 %v685_v2, 0.0 }
 0x236   : > { %v688_v4 = vadd.f32 %v1027_v3, %v1415_v49 }
 0x238   : > { %v706_v6 = vmax.f32 %v688_v4, 0.0 }
 0x23a   : > { %v714_v7 = vpack.c.bf16 %v706_v6, %v705_v5 }
 0x23c   : > { %1109 = vmatmul.mubr.bf16.gmra.mxu0 %v714_v7 }
 0x2cc   : > { %v1098_v49 = vpop.f32.mrf.mxu0 }
 0x2cd   : > { %v789_v9 = vadd.f32 %v1098_v49, %v942_v8 }
 0x2ce   : > { %v780_v10 = vpop.f32.mrf.mxu0 }
 0x2cf   : > { %845 = vst [vmem:[%s1440_s28 + $0x10] sm:$0xff] %v789_v9  ;;  %v781_v11 = vadd.f32 %v942_v8, %v780_v10 }
 0x2d0   : > { %v1099_v12 = vpop.f32.mrf.mxu0 }
 0x2d1   : > { %843 = vst [vmem:[%s1440_s28] sm:$0xff] %v781_v11  ;;  %v792_v13 = vadd.f32 %v1099_v12, %v942_v8 }
 0x2d2   : > { %v783_v14 = vpop.f32.mrf.mxu0 }
 0x2d3   : > { %846 = vst [vmem:[%s1440_s28 + $0x18] sm:$0xff] %v792_v13  ;;  %v784_v15 = vadd.f32 %v942_v8, %v783_v14 }
 0x2d5   : > { %844 = vst [vmem:[%s1440_s28 + $0x8] sm:$0xff] %v784_v15 }
 0x2dc   : > { %v1102_v16 = vpop.f32.mrf.mxu0 }
 0x2dd   : > { %v805_v17 = vadd.f32 %v1102_v16, %v942_v8 }
 0x2de   : > { %v796_v18 = vpop.f32.mrf.mxu0 }
 0x2df   : > { %849 = vst [vmem:[%s1440_s28 + $0x30] sm:$0xff] %v805_v17  ;;  %v797_v19 = vadd.f32 %v942_v8, %v796_v18 }
 0x2e0   : > { %v1103_v20 = vpop.f32.mrf.mxu0 }
 0x2e1   : > { %847 = vst [vmem:[%s1440_s28 + $0x20] sm:$0xff] %v797_v19  ;;  %v808_v21 = vadd.f32 %v1103_v20, %v942_v8 }
 0x2e2   : > { %v799_v22 = vpop.f32.mrf.mxu0 }
 0x2e3   : > { %850 = vst [vmem:[%s1440_s28 + $0x38] sm:$0xff] %v808_v21  ;;  %v800_v23 = vadd.f32 %v942_v8, %v799_v22 }
 0x2e5   : > { %848 = vst [vmem:[%s1440_s28 + $0x28] sm:$0xff] %v800_v23 }
 0x2ec   : > { %v1106_v24 = vpop.f32.mrf.mxu0 }
 0x2ed   : > { %v821_v25 = vadd.f32 %v1106_v24, %v942_v8 }
 0x2ee   : > { %v812_v26 = vpop.f32.mrf.mxu0 }
 0x2ef   : > { %853 = vst [vmem:[%s1440_s28 + $0x50] sm:$0xff] %v821_v25  ;;  %v813_v27 = vadd.f32 %v942_v8, %v812_v26 }
 0x2f0   : > { %v1107_v28 = vpop.f32.mrf.mxu0 }
 0x2f1   : > { %851 = vst [vmem:[%s1440_s28 + $0x40] sm:$0xff] %v813_v27  ;;  %v824_v29 = vadd.f32 %v1107_v28, %v942_v8 }
 0x2f2   : > { %v815_v30 = vpop.f32.mrf.mxu0 }
 0x2f3   : > { %854 = vst [vmem:[%s1440_s28 + $0x58] sm:$0xff] %v824_v29  ;;  %v816_v31 = vadd.f32 %v942_v8, %v815_v30 }
 0x2f5   : > { %852 = vst [vmem:[%s1440_s28 + $0x48] sm:$0xff] %v816_v31 }
 0x2fc   : > { %v1110_v32 = vpop.f32.mrf.mxu0 }
 0x2fd   : > { %v837_v33 = vadd.f32 %v1110_v32, %v942_v8 }
 0x2fe   : > { %v828_v34 = vpop.f32.mrf.mxu0 }
 0x2ff   : > { %857 = vst [vmem:[%s1440_s28 + $0x70] sm:$0xff] %v837_v33  ;;  %v829_v35 = vadd.f32 %v942_v8, %v828_v34 }
 0x300   : > { %v1111_v36 = vpop.f32.mrf.mxu0 }
 0x301   : > { %855 = vst [vmem:[%s1440_s28 + $0x60] sm:$0xff] %v829_v35  ;;  %v840_v37 = vadd.f32 %v1111_v36, %v942_v8 }
 0x302   : > { %v831_v38 = vpop.f32.mrf.mxu0 }
 0x303   : > { %858 = vst [vmem:[%s1440_s28 + $0x78] sm:$0xff] %v840_v37  ;;  %v832_v39 = vadd.f32 %v942_v8, %v831_v38 }
 0x305   : > { %856 = vst [vmem:[%s1440_s28 + $0x68] sm:$0xff] %v832_v39 }
 0x306 PF: > { %s16_s21 = sadd.s32 1, %s1126_s21  }
 0x307   : > { %p13_p4 = scmp.ge.s32.totalorder %s16_s21, 4  }
 0x309   :  { %15 = sbr.rel (!%p13_p4) target bundleno = 1 (0x1), region = 74 }

</bundles_post_ra>
